<compile_context>
chip_gen: v7x
topology: tpu7x:2x2x1
jax: 0.10.0
libtpu: 0.0.40
codegen_flags: <defaults>
</compile_context>

<pallas_src>
import functools

import jax
import jax.numpy as jnp
from jax import lax
from jax.experimental import pallas as pl
from jax.experimental.pallas import tpu as pltpu


def _lora_linear_kernel(counts_ref,          # scalar-prefetch: [max_loras] int32 token counts
                        idx_ref,             # [tT, 1]   int32 per-token adapter id
                        x_ref,               # [tT, D_in]
                        w_ref,               # [tN, D_in]  weight tile (D_out-tiled)
                        b_ref,               # [1, tN]     bias tile (zeros if bias not fused)
                        a_ref,               # [rank, D_in] lora_a[l]
                        bl_ref,              # [tN, rank]   lora_b[l] tile
                        out_ref,             # [tT, tN]
                        acc_ref):            # [tT, tN] f32 scratch accumulator
    l = pl.program_id(2)
    n_l = pl.num_programs(2)
    contract_last = (((1,), (1,)), ((), ()))

    # Base layer for this (T, D_out) tile: acc = x @ W_tile.T + bias_tile  (once per tile).
    @pl.when(l == 0)
    def _():
        base = lax.dot_general(x_ref[...], w_ref[...], dimension_numbers=contract_last,
                               preferred_element_type=jnp.float32)
        acc_ref[...] = base + b_ref[...].astype(jnp.float32)

    # LoRA for adapter l, skipped entirely if no token maps to it.
    @pl.when(counts_ref[l] > 0)
    def _():
        mask = idx_ref[...] == l                                            # [tT, 1]
        shrink = lax.dot_general(x_ref[...], a_ref[...],
                                 dimension_numbers=contract_last,
                                 preferred_element_type=jnp.float32)        # [tT, rank]
        # Mask at the (cheap) rank width; masked rows yield zero expand rows.
        shrink = jnp.where(mask, shrink, 0.0)
        expand = lax.dot_general(shrink.astype(bl_ref.dtype), bl_ref[...],
                                 dimension_numbers=contract_last,
                                 preferred_element_type=jnp.float32)        # [tT, tN]
        acc_ref[...] += expand

    # Single writeback + cast on the last adapter step.
    @pl.when(l == n_l - 1)
    def _():
        out_ref[...] = acc_ref[...].astype(out_ref.dtype)


def _pick_tile_t(t_pad):
    for c in (256, 128, 64, 32, 16, 8):
        if t_pad % c == 0:
            return c
    return t_pad


def _pick_tile_n(d_out, d_in, itemsize):
    if d_out % 128 == 0:
        # Cap weight tile at ~8 MiB so 2-deep buffering stays well inside v7x's 64 MiB VMEM.
        cands = [c for c in (1024, 512, 256, 128)
                 if d_out % c == 0 and c * d_in * itemsize <= 8 * 2**20]
        return cands[0] if cands else 128
    return d_out  # full-dim block is always legal


@functools.partial(jax.jit, static_argnames=("skip_bias_add", "compute_dtype"))
def replicated_linear_with_lora(x, weight, bias, lora_a_stacked, lora_b_stacked,
                                lora_indices, *, skip_bias_add=False, compute_dtype=None):
    """Forward of ReplicatedLinearWithLoRA.

    x:              [T, input_size]
    weight:         [output_size, input_size]
    bias:           [output_size] or None
    lora_a_stacked: [max_loras, 1, rank, input_size]
    lora_b_stacked: [max_loras, 1, output_size, rank]
    lora_indices:   [T] int32 per-token adapter id, -1 = no LoRA

    Returns (output, output_bias) mirroring the PyTorch module:
      skip_bias_add=False -> bias fused into output, output_bias=None
      skip_bias_add=True  -> bias NOT fused,         output_bias=bias
    """
    T, D_in = x.shape
    D_out = weight.shape[0]
    max_loras, _, rank, _ = lora_a_stacked.shape
    out_dtype = x.dtype

    lora_a = lora_a_stacked.reshape(max_loras, rank, D_in)
    lora_b = lora_b_stacked.reshape(max_loras, D_out, rank)

    if compute_dtype is not None:
        x_c = x.astype(compute_dtype)
        w_c = weight.astype(compute_dtype)
        lora_a = lora_a.astype(compute_dtype)
        lora_b = lora_b.astype(compute_dtype)
    else:
        x_c, w_c = x, weight

    # Bias handling: fuse only when the module would (skip_bias_add=False and bias exists).
    fuse_bias = (bias is not None) and (not skip_bias_add)
    bias_row = (bias if fuse_bias else jnp.zeros((D_out,), jnp.float32))
    bias2d = bias_row.reshape(1, D_out).astype(jnp.float32)

    # Pad tokens to a multiple of 8 (sublane); padded rows get adapter id -1 and are sliced off.
    T_pad = ((T + 7) // 8) * 8
    idx = lora_indices.astype(jnp.int32)
    if T_pad != T:
        x_c = jnp.pad(x_c, ((0, T_pad - T), (0, 0)))
        idx = jnp.pad(idx, (0, T_pad - T), constant_values=-1)
    idx2d = idx.reshape(T_pad, 1)

    # Per-adapter token counts (scalar prefetch) -> skip inactive adapters in-kernel.
    counts = jnp.sum(idx[:, None] == jnp.arange(max_loras, dtype=jnp.int32)[None, :],
                     axis=0).astype(jnp.int32)

    w_isz = jnp.dtype(w_c.dtype).itemsize
    x_isz = jnp.dtype(x_c.dtype).itemsize
    tT = _pick_tile_t(T_pad)
    tN = _pick_tile_n(D_out, D_in, w_isz)
    grid = (T_pad // tT, D_out // tN, max_loras)

    # VMEM budget estimate (double-buffered inputs + double-buffered output + f32 scratch).
    est = 2 * (tN * D_in * w_isz          # weight tiles
               + tT * D_in * x_isz        # x tiles
               + rank * D_in * w_isz      # lora_a
               + tN * rank * w_isz        # lora_b tiles
               + tN * 4 + tT * 4)         # bias + idx
    est += 2 * tT * tN * jnp.dtype(out_dtype).itemsize + tT * tN * 4
    vmem_limit = int(min(max(3 * est, 32 * 2**20), 56 * 2**20))  # stay under v7x's 64 MiB

    grid_spec = pltpu.PrefetchScalarGridSpec(
        num_scalar_prefetch=1,
        grid=grid,
        in_specs=[
            pl.BlockSpec((tT, 1), lambda i, j, l, counts: (i, 0)),             # per-token ids
            pl.BlockSpec((tT, D_in), lambda i, j, l, counts: (i, 0)),          # x
            pl.BlockSpec((tN, D_in), lambda i, j, l, counts: (j, 0)),          # weight tile
            pl.BlockSpec((1, tN), lambda i, j, l, counts: (0, j)),             # bias tile
            pl.BlockSpec((None, rank, D_in), lambda i, j, l, counts: (l, 0, 0)),   # lora_a[l]
            pl.BlockSpec((None, tN, rank), lambda i, j, l, counts: (l, j, 0)),     # lora_b[l]
        ],
        out_specs=pl.BlockSpec((tT, tN), lambda i, j, l, counts: (i, j)),
        scratch_shapes=[pltpu.VMEM((tT, tN), jnp.float32)],
    )

    out = pl.pallas_call(
        _lora_linear_kernel,
        out_shape=jax.ShapeDtypeStruct((T_pad, D_out), out_dtype),
        grid_spec=grid_spec,
        compiler_params=pltpu.CompilerParams(
            dimension_semantics=("parallel", "parallel", "arbitrary"),
            vmem_limit_bytes=vmem_limit),
    )(counts, idx2d, x_c, w_c, bias2d, lora_a, lora_b)

    if T_pad != T:
        out = out[:T]

    output_bias = bias if skip_bias_add else None
    return out, output_bias


def _reference(x, weight, bias, lora_a_stacked, lora_b_stacked, lora_indices):
    out = x @ weight.T + (0.0 if bias is None else bias[None, :])
    for l in range(lora_a_stacked.shape[0]):
        mask = (lora_indices == l)[:, None].astype(x.dtype)
        shrink = x @ lora_a_stacked[l, 0].T
        expand = shrink @ lora_b_stacked[l, 0].T
        out = out + mask * expand
    return out


if __name__ == "__main__":
    key = jax.random.PRNGKey(0)
    k1, k2, k3, k4, k5, k6 = jax.random.split(key, 6)

    T = 24           # num tokens (3 T-tiles of 8)
    D_in = 128       # input_size
    D_out = 384      # output_size (3 D_out-tiles of 128)
    rank = 8         # max_lora_rank
    max_loras = 3

    x = jax.random.normal(k1, (T, D_in), dtype=jnp.float32)
    weight = jax.random.normal(k2, (D_out, D_in), dtype=jnp.float32) * 0.1
    bias = jax.random.normal(k3, (D_out,), dtype=jnp.float32) * 0.1
    lora_a_stacked = jax.random.normal(k4, (max_loras, 1, rank, D_in), dtype=jnp.float32) * 0.1
    lora_b_stacked = jax.random.normal(k5, (max_loras, 1, D_out, rank), dtype=jnp.float32) * 0.1
    # per-token adapter ids; -1 means "no LoRA applied"
    lora_indices = jax.random.randint(k6, (T,), -1, max_loras).astype(jnp.int32)

    # skip_bias_add=False path (bias fused, output_bias None)
    out, out_bias = replicated_linear_with_lora(
        x, weight, bias, lora_a_stacked, lora_b_stacked, lora_indices)
    out = jax.block_until_ready(out)
    ref = _reference(x, weight, bias, lora_a_stacked, lora_b_stacked, lora_indices)
    assert out.shape == (T, D_out)
    assert out_bias is None
    assert jnp.allclose(out, ref, atol=1e-3, rtol=1e-3), "mismatch vs reference (fused bias)"

    # skip_bias_add=True path (bias NOT fused, returned separately)
    out2, out_bias2 = replicated_linear_with_lora(
        x, weight, bias, lora_a_stacked, lora_b_stacked, lora_indices, skip_bias_add=True)
    out2 = jax.block_until_ready(out2)
    ref2 = _reference(x, weight, None, lora_a_stacked, lora_b_stacked, lora_indices)
    assert jnp.allclose(out2, ref2, atol=1e-3, rtol=1e-3), "mismatch vs reference (skip bias)"
    assert out_bias2 is not None and jnp.allclose(out_bias2, bias)

    print("KERNEL_OK")
</pallas_src>

<mosaic_0001>
module attributes {stable_mosaic.version = 11 : i64} {
  func.func @_lora_linear_kernel(%arg0: i32, %arg1: i32, %arg2: i32, %arg3: memref<3xi32, #tpu.memory_space<smem>>, %arg4: memref<8x1xi32, #tpu.memory_space<vmem>>, %arg5: memref<8x128xf32, #tpu.memory_space<vmem>>, %arg6: memref<128x128xf32, #tpu.memory_space<vmem>>, %arg7: memref<1x128xf32, #tpu.memory_space<vmem>>, %arg8: memref<1x8x128xf32, #tpu.memory_space<vmem>>, %arg9: memref<1x128x8xf32, #tpu.memory_space<vmem>>, %arg10: memref<8x128xf32, #tpu.memory_space<vmem>>, %arg11: memref<8x128xf32, #tpu.memory_space<vmem>>) attributes {dimension_semantics = [#tpu.dimension_semantics<parallel>, #tpu.dimension_semantics<parallel>, #tpu.dimension_semantics<arbitrary>], iteration_bounds = array<i64: 3, 3, 3>, scalar_prefetch = 1 : i64, scratch_operands = 1 : i64, tpu.core_type = #tpu.core_type<tc>, window_params = [{transform_indices = @transform_0, window_bounds = array<i64: 8, 1>}, {transform_indices = @transform_1, window_bounds = array<i64: 8, 128>}, {transform_indices = @transform_2, window_bounds = array<i64: 128, 128>}, {transform_indices = @transform_3, window_bounds = array<i64: 1, 128>}, {transform_indices = @transform_4, window_bounds = array<i64: 1, 8, 128>}, {transform_indices = @transform_5, window_bounds = array<i64: 1, 128, 8>}, {transform_indices = @transform_6, window_bounds = array<i64: 8, 128>}]} {
    %c0_i32 = arith.constant 0 : i32
    %0 = arith.cmpi eq, %arg2, %c0_i32 : i32
    %1 = arith.extui %0 : i1 to i32
    %c0_i32_0 = arith.constant 0 : i32
    %2 = arith.cmpi ne, %1, %c0_i32_0 : i32
    scf.if %2 {
      %c0 = arith.constant 0 : index
      %c0_4 = arith.constant 0 : index
      %11 = vector.load %arg5[%c0, %c0_4] : memref<8x128xf32, #tpu.memory_space<vmem>>, vector<8x128xf32>
      %c0_5 = arith.constant 0 : index
      %c0_6 = arith.constant 0 : index
      %12 = vector.load %arg6[%c0_5, %c0_6] : memref<128x128xf32, #tpu.memory_space<vmem>>, vector<128x128xf32>
      %cst = arith.constant dense<0.000000e+00> : vector<8x128xf32>
      %13 = tpu.matmul %11, %12, %cst {dimension_numbers = #tpu.dot_dimension_numbers<[1], [1], [0], [0], [0, 0, 1, 0], [], []>} : vector<8x128xf32>, vector<128x128xf32>, vector<8x128xf32> -> vector<8x128xf32>
      %c0_7 = arith.constant 0 : index
      %c0_8 = arith.constant 0 : index
      %14 = vector.load %arg7[%c0_7, %c0_8] : memref<1x128xf32, #tpu.memory_space<vmem>>, vector<1x128xf32>
      %15 = vector.broadcast %14 : vector<1x128xf32> to vector<8x128xf32>
      %16 = arith.addf %13, %15 : vector<8x128xf32>
      %c0_9 = arith.constant 0 : index
      %c0_10 = arith.constant 0 : index
      %17 = vector.load %arg11[%c0_9, %c0_10] : memref<8x128xf32, #tpu.memory_space<vmem>>, vector<8x128xf32>
      tpu.vector_store %arg11[%c0_9, %c0_10], %16 {strides = array<i32>} : memref<8x128xf32, #tpu.memory_space<vmem>>, vector<8x128xf32>,
    } else {
    }
    %3 = arith.index_cast %arg2 : i32 to index
    %4 = memref.load %arg3[%3] : memref<3xi32, #tpu.memory_space<smem>>
    %c0_i32_1 = arith.constant 0 : i32
    %5 = arith.cmpi sgt, %4, %c0_i32_1 : i32
    %6 = arith.extui %5 : i1 to i32
    %c0_i32_2 = arith.constant 0 : i32
    %7 = arith.cmpi ne, %6, %c0_i32_2 : i32
    scf.if %7 {
      %c0 = arith.constant 0 : index
      %c0_4 = arith.constant 0 : index
      %11 = vector.load %arg4[%c0, %c0_4] : memref<8x1xi32, #tpu.memory_space<vmem>>, vector<8x1xi32>
      %12 = vector.broadcast %arg2 : i32 to vector<8x1xi32>
      %13 = arith.cmpi eq, %11, %12 : vector<8x1xi32>
      %c0_5 = arith.constant 0 : index
      %c0_6 = arith.constant 0 : index
      %14 = vector.load %arg5[%c0_5, %c0_6] : memref<8x128xf32, #tpu.memory_space<vmem>>, vector<8x128xf32>
      %c0_7 = arith.constant 0 : index
      %c0_8 = arith.constant 0 : index
      %c0_9 = arith.constant 0 : index
      %15 = vector.load %arg8[%c0_7, %c0_8, %c0_9] : memref<1x8x128xf32, #tpu.memory_space<vmem>>, vector<1x8x128xf32>
      %16 = vector.shape_cast %15 : vector<1x8x128xf32> to vector<8x128xf32>
      %cst = arith.constant dense<0.000000e+00> : vector<8x8xf32>
      %17 = tpu.matmul %14, %16, %cst {dimension_numbers = #tpu.dot_dimension_numbers<[1], [1], [0], [0], [0, 0, 1, 0], [], []>} : vector<8x128xf32>, vector<8x128xf32>, vector<8x8xf32> -> vector<8x8xf32>
      %cst_10 = arith.constant 0.000000e+00 : f32
      %18 = vector.shape_cast %13 : vector<8x1xi1> to vector<8x1xi1>
      %19 = vector.broadcast %18 : vector<8x1xi1> to vector<8x8xi1>
      %20 = vector.broadcast %cst_10 : f32 to vector<8x8xf32>
      %21 = arith.select %19, %17, %20 : vector<8x8xi1>, vector<8x8xf32>
      %c0_11 = arith.constant 0 : index
      %c0_12 = arith.constant 0 : index
      %c0_13 = arith.constant 0 : index
      %22 = vector.load %arg9[%c0_11, %c0_12, %c0_13] : memref<1x128x8xf32, #tpu.memory_space<vmem>>, vector<1x128x8xf32>
      %23 = vector.shape_cast %22 : vector<1x128x8xf32> to vector<128x8xf32>
      %cst_14 = arith.constant dense<0.000000e+00> : vector<8x128xf32>
      %24 = tpu.matmul %21, %23, %cst_14 {dimension_numbers = #tpu.dot_dimension_numbers<[1], [1], [0], [0], [0, 0, 1, 0], [], []>} : vector<8x8xf32>, vector<128x8xf32>, vector<8x128xf32> -> vector<8x128xf32>
      %c0_15 = arith.constant 0 : index
      %c0_16 = arith.constant 0 : index
      %25 = vector.load %arg11[%c0_15, %c0_16] : memref<8x128xf32, #tpu.memory_space<vmem>>, vector<8x128xf32>
      %26 = arith.addf %25, %24 : vector<8x128xf32>
      %c0_17 = arith.constant 0 : index
      %c0_18 = arith.constant 0 : index
      %27 = vector.load %arg11[%c0_17, %c0_18] : memref<8x128xf32, #tpu.memory_space<vmem>>, vector<8x128xf32>
      tpu.vector_store %arg11[%c0_17, %c0_18], %26 {strides = array<i32>} : memref<8x128xf32, #tpu.memory_space<vmem>>, vector<8x128xf32>,
    } else {
    }
    %c2_i32 = arith.constant 2 : i32
    %8 = arith.cmpi eq, %arg2, %c2_i32 : i32
    %9 = arith.extui %8 : i1 to i32
    %c0_i32_3 = arith.constant 0 : i32
    %10 = arith.cmpi ne, %9, %c0_i32_3 : i32
    scf.if %10 {
      %c0 = arith.constant 0 : index
      %c0_4 = arith.constant 0 : index
      %11 = vector.load %arg11[%c0, %c0_4] : memref<8x128xf32, #tpu.memory_space<vmem>>, vector<8x128xf32>
      %c0_5 = arith.constant 0 : index
      %c0_6 = arith.constant 0 : index
      %12 = vector.load %arg10[%c0_5, %c0_6] : memref<8x128xf32, #tpu.memory_space<vmem>>, vector<8x128xf32>
      tpu.vector_store %arg10[%c0_5, %c0_6], %11 {strides = array<i32>} : memref<8x128xf32, #tpu.memory_space<vmem>>, vector<8x128xf32>,
    } else {
    }
    return
  }
  func.func @transform_0(%arg0: i32, %arg1: i32, %arg2: i32, %arg3: memref<3xi32, #tpu.memory_space<smem>>) -> (i32, i32) {
    %c0_i32 = arith.constant 0 : i32
    %c0_i32_0 = arith.constant 0 : i32
    return %arg0, %c0_i32 : i32, i32
  }
  func.func @transform_1(%arg0: i32, %arg1: i32, %arg2: i32, %arg3: memref<3xi32, #tpu.memory_space<smem>>) -> (i32, i32) {
    %c0_i32 = arith.constant 0 : i32
    %c0_i32_0 = arith.constant 0 : i32
    return %arg0, %c0_i32 : i32, i32
  }
  func.func @transform_2(%arg0: i32, %arg1: i32, %arg2: i32, %arg3: memref<3xi32, #tpu.memory_space<smem>>) -> (i32, i32) {
    %c0_i32 = arith.constant 0 : i32
    %c0_i32_0 = arith.constant 0 : i32
    return %arg1, %c0_i32 : i32, i32
  }
  func.func @transform_3(%arg0: i32, %arg1: i32, %arg2: i32, %arg3: memref<3xi32, #tpu.memory_space<smem>>) -> (i32, i32) {
    %c0_i32 = arith.constant 0 : i32
    %c0_i32_0 = arith.constant 0 : i32
    return %c0_i32, %arg1 : i32, i32
  }
  func.func @transform_4(%arg0: i32, %arg1: i32, %arg2: i32, %arg3: memref<3xi32, #tpu.memory_space<smem>>) -> (i32, i32, i32) {
    %c0_i32 = arith.constant 0 : i32
    %c0_i32_0 = arith.constant 0 : i32
    %c0_i32_1 = arith.constant 0 : i32
    return %arg2, %c0_i32, %c0_i32_0 : i32, i32, i32
  }
  func.func @transform_5(%arg0: i32, %arg1: i32, %arg2: i32, %arg3: memref<3xi32, #tpu.memory_space<smem>>) -> (i32, i32, i32) {
    %c0_i32 = arith.constant 0 : i32
    %c0_i32_0 = arith.constant 0 : i32
    return %arg2, %arg1, %c0_i32 : i32, i32, i32
  }
  func.func @transform_6(%arg0: i32, %arg1: i32, %arg2: i32, %arg3: memref<3xi32, #tpu.memory_space<smem>>) -> (i32, i32) {
    %c0_i32 = arith.constant 0 : i32
    return %arg0, %arg1 : i32, i32
  }
}

</mosaic_0001>

<bundles_post_ra>
// kernel: replicated_linear_with_lora.1
= control target key start
LH: loop header
LB: loop body
LE: loop exit
PB: predicated region body
PF: predicated region fallthrough
CT: control target
= control target key end

     0   :  { %s1613_s0 = inlined_call_operand.vmem [shape: s32[3], index: 0, kind: input, shape index: {}]   ;;  %s1614_s1 = inlined_call_operand.vmem [shape: s32[24,1], index: 1, kind: input, shape index: {}]   ;;  %s1615_s2 = inlined_call_operand.vmem [shape: f32[24,128], index: 2, kind: input, shape index: {}]   ;;  %s1616_s3 = inlined_call_operand.vmem [shape: f32[384,128], index: 3, kind: input, shape index: {}]   ;;  %s1617_s4 = inlined_call_operand.vmem [shape: f32[1,384], index: 4, kind: input, shape index: {}]   ;;  %s1618_s5 = inlined_call_operand.vmem [shape: f32[3,8,128], index: 5, kind: input, shape index: {}]   ;;  %s1619_s6 = inlined_call_operand.vmem [shape: f32[3,384,8], index: 6, kind: input, shape index: {}]   ;;  %s1620_s7 = inlined_call_operand.hbm [shape: f32[24,384], index: 7, kind: output, shape index: {}]  }
   0x1   :  { %1630 = sst [smem:[#allocation19_spill]] %s1614_s1  ;;  %s12_s26 = sshll.u32 %s1613_s0, 4  ;;  %s13_s26 = int_to_ptr.vmem [resolvable:$true] %s12_s26 }
   0x2   :  { %1631 = sst [smem:[#allocation20_spill]] %s1615_s2  ;;  %s1173_s27 = scalar_lea.vmem %s13_s26, 16 }
   0x3   :  { %1632 = sst [smem:[#allocation21_spill]] %s1616_s3  ;;  %p1174_p0 = scmp.ne.s32.totalorder %s13_s26, %s1173_s27 }
   0x4   :  { %p1178_p1 = scmp.lt.s32.totalorder %s13_s26, %s13_s26  ;;  %p1179_p2 = scmp.lt.s32.totalorder %s1173_s27, %s1173_s27 }
   0x6   :  { %p1180_p3 = por %p1179_p2, %p1178_p1 }
   0x8   :  { %p1181_p4 = pnand %p1180_p3, %p1174_p0 }
   0xa   :  { %1184 = shalt.err (!%p1181_p4)  }
   0xb   :  { %s1299_s28 = smov [#allocation4]  }
   0xc   :  { %15 = dma.vmem_to_smem %s13_s26, 16, %s1299_s28, [#allocation3] }
   0xd   :  { %1253 = dma.done.wait [#allocation3], 16 }
   0xe   :  { %1254 = vsyncadd [#allocation3], 4294967280 }
   0xf   :  { %17 = sfence }
  0x10   :  { %18 = vsyncpa [#allocation6], 0 }
  0x11   :  { %20 = vsyncpa [#allocation6 + $0x1], 0  ;;  %s1351_s29 = smov 0   ;;  %s1353_s30 = smov 0  }
  0x12   :  { %s1355_s0 = smov 0   ;;  %s1357_s8 = smov 0  }
  0x13   :  { %s1359_s9 = smov 0   ;;  %s1361_s10 = smov 0  }
  0x14   :  { %s1363_s11 = smov 0   ;;  %s1365_s12 = smov 0  }
  0x15   :  { %s1367_s13 = smov 0   ;;  %s1369_s14 = smov 0  }
  0x16 LB: > { %1633 = sst [smem:[#allocation9_spill]] %s1261_s29  ;;  %s870_s15 = sadd.s32 4294967295, %s1297_s14   ;;  %s1297_s14 = sphi %s1369_s14, %s26_s14   ;;  %s1293_s13 = sphi %s1367_s13, %s1660_s13   ;;  %s1289_s12 = sphi %s1365_s12, %s1659_s12   ;;  %s1285_s11 = sphi %s1363_s11, %s1658_s11   ;;  %s1281_s10 = sphi %s1361_s10, %s1657_s10   ;;  %s1277_s9 = sphi %s1359_s9, %s1656_s9   ;;  %s1273_s8 = sphi %s1357_s8, %s1655_s8   ;;  %s1269_s0 = sphi %s1355_s0, %s1663_s0   ;;  %s1265_s30 = sphi %s1353_s30, %s1662_s30   ;;  %s1261_s29 = sphi %s1351_s29, %s1661_s29  }
  0x17   : > { %1634 = sst [smem:[#allocation10_spill]] %s1269_s0  ;;  %s871_s16 = sadd.s32 4294967294, %s1297_s14  }
  0x18   : > { %1635 = sst [smem:[#allocation11_spill]] %s1285_s11  ;;  %s38_s17 = sadd.s32 1, %s1285_s11 }
  0x19   : > { %1636 = sst [smem:[#allocation12_spill]] %s1289_s12  ;;  %p39_p5 = scmp.ge.s32.totalorder %s38_s17, 3 }
  0x1a   : > { %1637 = sst [smem:[#allocation13_spill]] %s1293_s13  ;;  %s41_s18 = sadd.s32 1, %s1289_s12 }
  0x1b   : > { %s45_s19 = sadd.s32 1, %s1293_s13  ;;  %p222_p6 = scmp.ne.s32.totalorder %s1269_s0, %s1265_s30 }
  0x1c   : > { %s1665_s17 = smov (%p39_p5, %s38_s17), 0  ;;  %s1667_s18 = smov (!%p39_p5, %s41_s18), %s1289_s12 }
  0x1d   : > { %1638 = sst [smem:[#allocation14_spill]] %s1665_s17  ;;  %p223_p7 = scmp.eq.s32.totalorder %s870_s15, 26 }
  0x1e   : > { %p228_p8 = scmp.ne.s32.totalorder %s1265_s30, %s1261_s29  ;;  %p43_p9 = scmp.ge.s32.totalorder %s1667_s18, 3 }
  0x1f   : > { %p229_p10 = scmp.eq.s32.totalorder %s871_s16, 26  ;;  %p1413_p11 = por %p223_p7, %p222_p6 }
  0x20   : > { %s1669_s18 = smov (%p43_p9, %s1667_s18), 0  ;;  %s1671_s19 = smov (!%p43_p9, %s45_s19), %s1293_s13 }
  0x21   : > { %1640 = sst [smem:[#allocation15_spill]] %s1669_s18  ;;  %p1420_p12 = por %p229_p10, %p228_p8 }
  0x22   : > { %p874_p13 = scmp.ge.s32.totalorder %s1297_s14, 1  ;;  %p47_p0 = scmp.ge.s32.totalorder %s1671_s19, 3 }
  0x23   : > { %s1641_s21 = scalar_select %p1420_p12, 1, 0 }
  0x24   : > { %p296_p1 = scmp.lt.s32.totalorder %s1297_s14, 28  ;;  %s208_s22 = ssub.s32 %s1289_s12, %s1669_s18 }
  0x25   : > { %1642 = sst [smem:[#allocation16_spill]] %s1641_s21  ;;  %s1673_s19 = smov (%p47_p0, %s1671_s19), 0 }
  0x26   : > { %1643 = sst [smem:[#allocation17_spill]] %s1673_s19  ;;  %p297_p2 = pnand %p874_p13, %p296_p1 }
  0x27   : > { %s207_s23 = ssub.s32 %s1293_s13, %s1673_s19  ;;  %s212_s25 = sadd.s32 1, %s1269_s0 }
  0x28   : > { %s209_s24 = sor.u32 %s208_s22, %s207_s23  ;;  %300 = sbr.rel (%p297_p2) target bundleno = 813 (0x32d), region = 44 }
  0x29   : > { %p210_p3 = scmp.eq.s32.totalorder %s209_s24, 0  ;;  %s1624_s27 = sand.u32 (!%p297_p2), 1, %s1265_s30  }
  0x2a   : > { %p350_p4 = scmp.lt.s32.totalorder (!%p297_p2), %s1281_s10, 2  ;;  %s1440_s28 = sshll.u32 (!%p297_p2), %s1624_s27, 3 }
  0x2b   : > { %s1434_s26 = scalar_select %p210_p3, %s1269_s0, %s212_s25  }
  0x2c   : > { %s878_s15 = sshll.u32 (!%p297_p2), %s1277_s9, 4  ;;  %p364_p6 = scmp.lt.s32.totalorder (!%p297_p2), %s1277_s9, 2 }
  0x2d   : > { %1644 = sst [smem:[#allocation18_spill]] %s1434_s26  ;;  %p359_p5 = scmp.lt.s32.totalorder (!%p297_p2), %s878_s15, 47 }
  0x2e   : > { %s1645_s1 = sld [smem:[#allocation19_spill]] (!%p297_p2)  ;;  %s1646_s2 = sld [smem:[#allocation20_spill]] (!%p297_p2) }
  0x2f   : > { %s351_s16 = scalar_select %p350_p4, %s1281_s10, 2 }
  0x30   : > { %s1675_s15 = smov (!%p359_p5, %s878_s15), 47  ;;  %p367_p7 = scmp.lt.s32.totalorder %s1273_s8, 2 }
  0x31   : > { %s876_s22 = sshll.u32 %s351_s16, 3  ;;  %s879_s13 = sshll.u32 %s1675_s15, 3 }
  0x32   : > { %s1647_s3 = sld [smem:[#allocation21_spill]]  ;;  %p883_p8 = scmp.ne.s32.totalorder %s1273_s8, 0 }
  0x33   : > { %s1462_s16 = scalar_select %p364_p6, %s1277_s9, 2 }
  0x34   : > { %s1448_s25 = scalar_lea.vmem %s1645_s1, %s876_s22  ;;  %s1453_s17 = scalar_lea.vmem %s1646_s2, %s876_s22  ;;  %v1300_v2 = vmov (!%p883_p8), 0.0|0.0   ;;  %vm1301_vm0 = vmmov (!%p883_p8), 0   ;;  %v1302_v4 = vmov (!%p883_p8), 0.0  }
  0x35   : > { %s368_s26 = scalar_select %p367_p7, %s1273_s8, 2 }
  0x36   : > { %s366_s24 = scalar_lea.vmem %s1617_s4, %s1462_s16  ;;  %384 = sbr.rel (%p883_p8) target bundleno = 338 (0x152), region = 48  ;;  %1019 = vmatprep.subr.bf16.mxu0 (!%p883_p8), %v1300_v2  ;;  %976 = vmatprep.mubr.msk.f32.mxu0 (!%p883_p8), %vm1301_vm0, %v1302_v4  ;;  %v385_v26 = vld [vmem:[%s1453_s17] sm:$0xff] (!%p883_p8) }
  0x37   : > { %s880_s1 = sshll.u32 %s368_s26, 3  ;;  %s1075_s21 = smul.u32 48, %s368_s26  ;;  %v884_v27 = vld [vmem:[%s366_s24] ss:$0 sm:$0xff] (!%p883_p8) }
  0x38   : > { %s1459_s11 = scalar_lea.vmem %s1647_s3, %s879_s13  ;;  %s1472_s22 = scalar_lea.vmem %s1618_s5, %s880_s1 }
  0x39   : > { %s377_s2 = sadd.s32 %s1075_s21, %s1675_s15  ;;  %s349_s3 = scalar_lea.vmem [#allocation5], %s1440_s28  ;;  %v386_v0 = vld [vmem:[%s1459_s11] sm:$0xff] (!%p883_p8)  ;;  %v387_v1 = vld [vmem:[%s1459_s11 + $0x8] sm:$0xff] (!%p883_p8)  ;;  %v388_v5 = vld [vmem:[%s1459_s11 + $0x10] sm:$0xff] (!%p883_p8) }
  0x3a   : > { %s882_s29 = sshll.u32 %s377_s2, 3  ;;  %v1020_v3 = vpack.c.bf16 (!%p883_p8), %v387_v1, %v386_v0  ;;  %v389_v6 = vld [vmem:[%s1459_s11 + $0x18] sm:$0xff] (!%p883_p8)  ;;  %v390_v8 = vld [vmem:[%s1459_s11 + $0x20] sm:$0xff] (!%p883_p8)  ;;  %v391_v9 = vld [vmem:[%s1459_s11 + $0x28] sm:$0xff] (!%p883_p8) }
  0x3b   : > { %s1477_s27 = scalar_lea.vmem %s1619_s6, %s882_s29  ;;  %v1023_v7 = vpack.c.bf16 (!%p883_p8), %v389_v6, %v388_v5  ;;  %v1026_v10 = vpack.c.bf16 (!%p883_p8), %v391_v9, %v390_v8  ;;  %v392_v11 = vld [vmem:[%s1459_s11 + $0x30] sm:$0xff] (!%p883_p8)  ;;  %v393_v12 = vld [vmem:[%s1459_s11 + $0x38] sm:$0xff] (!%p883_p8)  ;;  %v394_v14 = vld [vmem:[%s1459_s11 + $0x40] sm:$0xff] (!%p883_p8) }
  0x3c   : > { %1021 = vmatpush3.bf16.xpose.msra.mxu0 (!%p883_p8), %v1020_v3  ;;  %v1029_v13 = vpack.c.bf16 (!%p883_p8), %v393_v12, %v392_v11  ;;  %v395_v15 = vld [vmem:[%s1459_s11 + $0x48] sm:$0xff] (!%p883_p8)  ;;  %v396_v17 = vld [vmem:[%s1459_s11 + $0x50] sm:$0xff] (!%p883_p8)  ;;  %v397_v18 = vld [vmem:[%s1459_s11 + $0x58] sm:$0xff] (!%p883_p8) }
  0x3d   : > { %1022 = vmatprep.subr.bf16.mxu0 %v1300_v2  ;;  %v1032_v16 = vpack.c.bf16 %v395_v15, %v394_v14  ;;  %v1035_v19 = vpack.c.bf16 %v397_v18, %v396_v17  ;;  %v398_v20 = vld [vmem:[%s1459_s11 + $0x60] sm:$0xff]  ;;  %v399_v21 = vld [vmem:[%s1459_s11 + $0x68] sm:$0xff]  ;;  %v400_v23 = vld [vmem:[%s1459_s11 + $0x70] sm:$0xff] }
  0x3e   : > { %v1038_v22 = vpack.c.bf16 %v399_v21, %v398_v20  ;;  %v401_v24 = vld [vmem:[%s1459_s11 + $0x78] sm:$0xff] }
  0x3f   : > { %v1041_v25 = vpack.c.bf16 %v401_v24, %v400_v23 }
  0x44   : > { %1024 = vmatpush3.bf16.xpose.msra.mxu0 %v1023_v7 }
  0x45   : > { %1025 = vmatprep.subr.bf16.mxu0 %v1300_v2 }
  0x4c   : > { %1027 = vmatpush3.bf16.xpose.msra.mxu0 %v1026_v10 }
  0x4d   : > { %1028 = vmatprep.subr.bf16.mxu0 %v1300_v2 }
  0x54   : > { %1030 = vmatpush3.bf16.xpose.msra.mxu0 %v1029_v13 }
  0x55   : > { %1031 = vmatprep.subr.bf16.mxu0 %v1300_v2 }
  0x5c   : > { %1033 = vmatpush3.bf16.xpose.msra.mxu0 %v1032_v16 }
  0x5d   : > { %1034 = vmatprep.subr.bf16.mxu0 %v1300_v2 }
  0x64   : > { %1036 = vmatpush3.bf16.xpose.msra.mxu0 %v1035_v19 }
  0x65   : > { %1037 = vmatprep.subr.bf16.mxu0 %v1300_v2 }
  0x6c   : > { %1039 = vmatpush3.bf16.xpose.msra.mxu0 %v1038_v22 }
  0x6d   : > { %1040 = vmatprep.subr.bf16.mxu0 %v1300_v2 }
  0x74   : > { %1042 = vmatpush3.bf16.xpose.msra.mxu0 %v1041_v25 }
  0x7b   : > { %977 = vmatmul.mubr.f32.vlgmr.msra.gmra.mrb[0].mxu0 %v385_v26 }
 0x14e   : > { %v475_v28 = vpop.f32.mrb[0].mxu0 }
 0x14f   : > { %v476_v29 = vadd.f32 %v884_v27, %v475_v28  ;;  %v978_v30 = vpop.f32.mrb[1].mxu0 }
 0x151   : > { %479 = vst [vmem:[#allocation2] sm:$0xff] %v476_v29 }
 0x152 PF: > { %s480_s29 = sld [smem:[#allocation4 + %s1273_s8]] }
 0x158   : > { %p885_p9 = scmp.le.s32.totalorder %s480_s29, 0 }
 0x159   : > { %v489_v31 = vld [vmem:[%s1472_s22] sm:$0xff] (!%p885_p9)  ;;  %v486_v33 = vstv (!%p885_p9), %s1273_s8  ;;  %v1303_v34 = vmov (!%p885_p9), 0.0   ;;  %vm1304_vm1 = vmmov (!%p885_p9), 0   ;;  %v567_v36 = vld [vmem:[%s1477_s27 + $0x8] sm:$0xff] (!%p885_p9)  ;;  %vm582_vm3 = vcmask (!%p885_p9), 64512   ;;  %v568_v43 = vld [vmem:[%s1477_s27 + $0x10] sm:$0xff] (!%p885_p9) }
 0x15a   : > { %484 = sbr.rel (%p885_p9) target bundleno = 778 (0x30a), region = 52  ;;  %v485_v32 = vld [vmem:[%s1448_s25] sm:$0xff] (!%p885_p9)  ;;  %979 = vmatprep.subr.mxu0 (!%p885_p9), %v1303_v34  ;;  %981 = vmatprep.mubr.msk.f32.mxu0 (!%p885_p9), %vm1304_vm1, %v1303_v34  ;;  %v1305_v38 = vmov (!%p885_p9), 0   ;;  %vm1513_vm4 = vmpackc.low (!%p885_p9), %vm582_vm3, %vm582_vm3  ;;  %v1306_v42 = vmov (!%p885_p9), 0.0|0.0   ;;  %v569_v44 = vld [vmem:[%s1477_s27 + $0x18] sm:$0xff] (!%p885_p9) }
 0x15b   : > { %vm487_vm2 = vcmp.eq.s32.totalorder (!%p885_p9), %v485_v32, %v486_v33  ;;  %v566_v35 = vld [vmem:[%s1477_s27] sm:$0xff] (!%p885_p9)  ;;  %980 = vmatpush3.xpose.msra.mxu0 (!%p885_p9), %v489_v31  ;;  %1172 = vset.pattern.permute.xlu0 (!%p885_p9), %v1305_v38  ;;  %v1048_v45 = vpack.c.bf16 (!%p885_p9), %v569_v44, %v568_v43  ;;  %v571_v47 = vld [vmem:[%s1477_s27 + $0x28] sm:$0xff] (!%p885_p9)  ;;  %v572_v49 = vld [vmem:[%s1477_s27 + $0x30] sm:$0xff] (!%p885_p9) }
 0x15c   : > { %v488_v37 = vld [vmem:[%s1453_s17] sm:$0xff] (!%p885_p9)  ;;  %v560_v39 = vsel (!%p885_p9), %vm487_vm2, 1, %v1305_v38  ;;  %v1044_v40 = vpack.c.bf16 (!%p885_p9), %v567_v36, %v566_v35  ;;  %1043 = vmatprep.subr.bf16.mxu1 (!%p885_p9), %v1306_v42  ;;  %1016 = vmatprep.mubr.msk.f32.mxu1 (!%p885_p9), %vm1304_vm1, %v1303_v34  ;;  %v573_v50 = vld [vmem:[%s1477_s27 + $0x38] sm:$0xff] (!%p885_p9)  ;;  %v575_v53 = vld [vmem:[%s1477_s27 + $0x48] sm:$0xff] (!%p885_p9) }
 0x15d   : > { %562 = vperm.xlu0 (!%p885_p9), %1172, %v560_v39   ;;  %v570_v46 = vld [vmem:[%s1477_s27 + $0x20] sm:$0xff] (!%p885_p9)  ;;  %v1056_v51 = vpack.c.bf16 (!%p885_p9), %v573_v50, %v572_v49  ;;  %v576_v55 = vld [vmem:[%s1477_s27 + $0x50] sm:$0xff] (!%p885_p9)  ;;  %v577_v56 = vld [vmem:[%s1477_s27 + $0x58] sm:$0xff] (!%p885_p9) }
 0x15e   : > { %1046 = vmatpush3.bf16.xpose.msk.msra.mxu1 (!%p885_p9), %vm1513_vm4, %v1044_v40  ;;  %982 = vmatmul.mubr.f32.vlgmr.msra.gmra.mrb[0].mxu0 (!%p885_p9), %v488_v37  ;;  %v1052_v48 = vpack.c.bf16 (!%p885_p9), %v571_v47, %v570_v46  ;;  %v574_v52 = vld [vmem:[%s1477_s27 + $0x40] sm:$0xff] (!%p885_p9)  ;;  %v1064_v57 = vpack.c.bf16 (!%p885_p9), %v577_v56, %v576_v55  ;;  %v579_v59 = vld [vmem:[%s1477_s27 + $0x68] sm:$0xff] (!%p885_p9)  ;;  %v580_v61 = vld [vmem:[%s1477_s27 + $0x70] sm:$0xff] (!%p885_p9) }
 0x15f   : > { %1047 = vmatprep.subr.bf16.mxu1 (!%p885_p9), %v1306_v42  ;;  %v1060_v54 = vpack.c.bf16 (!%p885_p9), %v575_v53, %v574_v52  ;;  %v578_v58 = vld [vmem:[%s1477_s27 + $0x60] sm:$0xff] (!%p885_p9)  ;;  %v581_v62 = vld [vmem:[%s1477_s27 + $0x78] sm:$0xff] (!%p885_p9) }
 0x160   : > { %v1068_v60 = vpack.c.bf16 (!%p885_p9), %v579_v59, %v578_v58  ;;  %v1072_v63 = vpack.c.bf16 (!%p885_p9), %v581_v62, %v580_v61  ;;  %v704_v4 = vld [vmem:[#allocation2] sm:$0xff] (!%p885_p9) }
 0x166   : > { %1050 = vmatpush3.bf16.xpose.msk.msra.mxu1 %vm1513_vm4, %v1048_v45 }
 0x167   : > { %1051 = vmatprep.subr.bf16.mxu1 %v1306_v42 }
 0x16e   : > { %1054 = vmatpush3.bf16.xpose.msk.msra.mxu1 %vm1513_vm4, %v1052_v48 }
 0x16f   : > { %1055 = vmatprep.subr.bf16.mxu1 %v1306_v42 }
 0x176   : > { %1058 = vmatpush3.bf16.xpose.msk.msra.mxu1 %vm1513_vm4, %v1056_v51 }
 0x177   : > { %1059 = vmatprep.subr.bf16.mxu1 %v1306_v42 }
 0x17e   : > { %1062 = vmatpush3.bf16.xpose.msk.msra.mxu1 %vm1513_vm4, %v1060_v54 }
 0x17f   : > { %1063 = vmatprep.subr.bf16.mxu1 %v1306_v42 }
 0x186   : > { %1066 = vmatpush3.bf16.xpose.msk.msra.mxu1 %vm1513_vm4, %v1064_v57 }
 0x187   : > { %1067 = vmatprep.subr.bf16.mxu1 %v1306_v42 }
 0x18e   : > { %1070 = vmatpush3.bf16.xpose.msk.msra.mxu1 %vm1513_vm4, %v1068_v60 }
 0x18f   : > { %1071 = vmatprep.subr.bf16.mxu1 %v1306_v42 }
 0x196   : > { %1074 = vmatpush3.bf16.xpose.msk.msra.mxu1 %vm1513_vm4, %v1072_v63 }
 0x1dc   : > { %v563_v0 = vpop.permute.xlu0 %562 }
 0x1dd   : > { %vm564_vm5 = vcmp.eq.s32.totalorder %v563_v0, 1 }
 0x231   : > { %v556_v1 = vpop.f32.mrb[0].mxu0 }
 0x232   : > { %v565_v2 = vsel %vm564_vm5, %v556_v1, 0.0  ;;  %v983_v3 = vpop.f32.mrb[1].mxu0 }
 0x233   : > { %1017 = vmatmul.mubr.msk.f32.vlgmr.msra.gmra.mrb[0].mxu1 %vm582_vm3, %v565_v2 }
 0x306   : > { %v700_v5 = vpop.f32.mrb[0].mxu1 }
 0x307   : > { %v705_v6 = vadd.f32 %v704_v4, %v700_v5  ;;  %v1018_v7 = vpop.f32.mrb[1].mxu1 }
 0x309   : > { %706 = vst [vmem:[#allocation2] sm:$0xff] %v705_v6 }
 0x30a PF: > { %p903_p10 = scmp.ne.s32.totalorder %s1273_s8, 2 }
 0x30c   : > { %710 = sbr.rel (%p903_p10) target bundleno = 787 (0x313), region = 56 }
 0x310   : > { %v711_v8 = vld [vmem:[#allocation2] sm:$0xff] (!%p903_p10) }
 0x311   : > { %712 = vst [vmem:[%s349_s3] sm:$0xff] (!%p903_p10), %v711_v8 }
 0x313 PF: > { %s1076_s0 = smul.u32 3, %s1281_s10  ;;  %s729_s11 = sshll.u32 %s349_s3, 4  ;;  %s1556_s11 = int_to_ptr.vmem [resolvable:$true] %s729_s11 }
 0x314   : > { %s1650_s25 = sand.u32 1, %s1265_s30   ;;  %s1185_s23 = scalar_lea.vmem %s1556_s11, 128 }
 0x315   : > { %s725_s17 = sadd.s32 %s1277_s9, %s1076_s0  ;;  %s714_s16 = scalar_lea.sflag [#allocation6], %s1650_s25 }
 0x316   : > { %s905_s8 = sshll.u32 %s725_s17, 7  ;;  %p1186_p13 = scmp.ne.s32.totalorder %s1556_s11, %s1185_s23 }
 0x317   : > { %s727_s15 = scalar_lea.hbm %s1620_s7, %s905_s8  ;;  %s1307_s10 = smov [#allocation5]  }
 0x318   : > { %p1187_p0 = pnand %p1186_p13, %p1413_p11  ;;  %s1189_s3 = sshll.u32 %s1307_s10, 4  ;;  %s1190_s3 = int_to_ptr.vmem [resolvable:$false] %s1189_s3 }
 0x319   : > { %s1191_s9 = scalar_lea.vmem %s1190_s3, 256  ;;  %p1192_p2 = scmp.lt.s32.totalorder %s1556_s11, %s1190_s3 }
 0x31a   : > { %p1188_p1 = pneg %p1187_p0  ;;  %p1193_p3 = scmp.lt.s32.totalorder %s1191_s9, %s1185_s23 }
 0x31c   : > { %p1194_p4 = por %p1193_p3, %p1192_p2 }
 0x31e   : > { %p1195_p5 = pnand %p1194_p4, %p1188_p1 }
 0x320   : > { %1198 = shalt.err (!%p1195_p5)
}
 0x321   : > { %s1199_s28 = scalar_lea.hbm %s727_s15, 128  ;;  %s1203_s19 = scalar_lea.hbm %s1620_s7, 1152 }
 0x322   : > { %p1200_p6 = scmp.ne.s32.totalorder %s727_s15, %s1199_s28  ;;  %p1204_p9 = scmp.lt.u32.totalorder %s727_s15, %s1620_s7 }
 0x323   : > { %p1205_p10 = scmp.lt.u32.totalorder %s1203_s19, %s1199_s28  ;;  %p1207_p0 = scmp.lt.u32.totalorder %s1199_s28, %s727_s15 }
 0x324   : > { %p1201_p7 = pnand %p1200_p6, %p1413_p11 }
 0x325   : > { %p1206_p13 = por %p1205_p10, %p1204_p9 }
 0x326   : > { %p1202_p8 = pneg %p1201_p7 }
 0x327   : > { %p1208_p2 = por %p1207_p0, %p1206_p13 }
 0x329   : > { %p1209_p1 = pnand %p1208_p2, %p1202_p8 }
 0x32b   : > { %1212 = shalt.err (!%p1209_p1)
}
 0x32c   : > { %1077 = dma.vmem_to_hbm [thread:$0]  (%p1413_p11), %s1556_s11, 128, %s727_s15, %s714_s16  }
 0x32d PF: > { %s1651_s13 = sld [smem:[#allocation9_spill]]  ;;  %p1083_p3 = scmp.ge.s32.totalorder %s1297_s14, 2 }
 0x32f   : > { %p1080_p4 = pnand %p1083_p3, %p1420_p12 }
 0x333   : > { %s741_s1 = sand.u32 1, %s1651_s13  }
 0x334   : > { %s742_s2 = scalar_lea.sflag [#allocation6], %s741_s1 }
 0x335   : > { %1256 = dma.done.wait (!%p1080_p4), %s742_s2, 128  }
 0x336   : > { %1258 = vsyncadd (!%p1080_p4), %s742_s2, 4294967168  ;;  %s26_s14 = sadd.s32 1, %s1297_s14   ;;  %s1653_s0 = sld [smem:[#allocation10_spill]] }
 0x337   : > { %p23_p5 = scmp.ge.s32.totalorder %s26_s14, 29   ;;  %s1654_s17 = sld [smem:[#allocation18_spill]] }
 0x338   : > { %s1655_s8 = sld [smem:[#allocation11_spill]]  ;;  %s1656_s9 = sld [smem:[#allocation12_spill]] }
 0x339   : > { %s1657_s10 = sld [smem:[#allocation13_spill]]  ;;  %s1658_s11 = sld [smem:[#allocation14_spill]] }
 0x33a   : > { %s1659_s12 = sld [smem:[#allocation15_spill]]  ;;  %s1660_s13 = sld [smem:[#allocation17_spill]] }
 0x33b   : > { %s1661_s29 = smov %s1265_s30  ;;  %25 = sbr.rel (!%p23_p5) target bundleno = 22 (0x16), region = 106 }
 0x33c   : > { %s1662_s30 = smov %s1653_s0 }
 0x33d   : > { %s1663_s0 = smov %s1654_s17 }
 0x342   :  { %747 = vsyncpa [#allocation6], 1 }
 0x343   :  { %749 = vsyncpa [#allocation6 + $0x1], 1 }

</bundles_post_ra>
